<compile_context>
chip_gen: v5e
topology: v5e:2x2
jax: 0.10.0
libtpu: 0.0.40
codegen_flags: <defaults>
</compile_context>

<pallas_src>
import functools
import jax
import jax.numpy as jnp
from jax.experimental import pallas as pl
from jax.experimental.pallas import tpu as pltpu


def _round_up(x, m):
    return (x + m - 1) // m * m


def _vmem_budgets():
    """Generation-aware (row-tile budget, scoped-VMEM limit) in bytes."""
    try:
        cap = int(pltpu.get_tpu_info().vmem_capacity_bytes)
    except Exception:
        cap = 64 << 20  # conservative fallback: v7x-sized VMEM
    if cap >= (100 << 20):          # v5e / v6e: 128 MiB physical VMEM
        return 24 << 20, 64 << 20
    return 12 << 20, 32 << 20       # v7x: 64 MiB physical VMEM, 2 TCs


def _pick_row_tile(n_rows, padded_row_bytes, vmem_budget_bytes):
    """Largest row tile (multiple of 8) whose double-buffered traffic fits the
    budget; capped so large problems keep >= ~8 grid steps (>=3-4 iterations
    per v7x TensorCore) and the tile never exceeds the (8-rounded) problem."""
    tn = (vmem_budget_bytes // (2 * padded_row_bytes)) // 8 * 8
    tn = int(max(8, min(tn, 2048)))
    if n_rows >= 64:
        tn = min(tn, max(8, _round_up(-(-n_rows // 8), 8)))
    tn = min(tn, _round_up(n_rows, 8))
    return max(8, tn)


def _encoder_kernel(bert_ref, lex_ref, pin_ref, freq_ref, out_ref, *,
                    group_num, max_matched, word_size, pinyin_size,
                    hidden_bert):
    # bert_ref: (TN, HB)            lex_ref : (TN, G*M*WS)
    # pin_ref : (TN, G*M*PS)        freq_ref: (TN, FL)  (lanes >= G*M, zero pad)
    # out_ref : (TN, HB + G*(WS+PS))
    tn = bert_ref.shape[0]
    freq = freq_ref[...]                                    # (TN, FL)

    # lexicons_freq.sum(dim=(-2,-1)); zeros replaced with 1 (padded lanes are 0)
    fsum = jnp.sum(freq, axis=-1, keepdims=True)            # (TN, 1)
    fsum = jnp.where(fsum == 0.0, 1.0, fsum)
    inv = 1.0 / fsum                                        # exact divide

    # BERT embedding pass-through: one wide store at lane offset 0
    out_ref[:, 0:hidden_bert] = bert_ref[...]

    for g in range(group_num):                              # static unroll
        wl = jnp.zeros((tn, word_size), jnp.float32)
        wp = jnp.zeros((tn, pinyin_size), jnp.float32)
        for m in range(max_matched):                        # static unroll
            j = g * max_matched + m
            f = freq[:, j:j + 1]                            # (TN, 1)
            wl = wl + f * lex_ref[:, j * word_size:(j + 1) * word_size]
            wp = wp + f * pin_ref[:, j * pinyin_size:(j + 1) * pinyin_size]
        # store each group's weighted block as soon as it is ready
        off = hidden_bert + g * (word_size + pinyin_size)
        out_ref[:, off:off + word_size] = wl * inv
        out_ref[:, off + word_size:off + word_size + pinyin_size] = wp * inv


def encoder_forward(bert_seqs_embed, seqs_lexicon_embed, pinyin_embed,
                    lexicons_freq):
    """bert_seqs_embed (B,L,HB) f32, seqs_lexicon_embed (B,L,G,M,WS) f32,
    pinyin_embed (B,L,G,M,PS) f32, lexicons_freq (B,L,G,M) int
    -> (B, L, HB + G*(WS+PS))."""
    b, l, hb = bert_seqs_embed.shape
    _, _, g, m, ws = seqs_lexicon_embed.shape
    ps = pinyin_embed.shape[-1]
    gm = g * m
    h_out = hb + g * (ws + ps)
    n = b * l

    # lane-dense 2-D layouts (contiguous reshapes, no copies)
    bert2 = bert_seqs_embed.reshape(n, hb).astype(jnp.float32)
    lex2 = seqs_lexicon_embed.reshape(n, gm * ws).astype(jnp.float32)
    pin2 = pinyin_embed.reshape(n, gm * ps).astype(jnp.float32)
    freq2 = lexicons_freq.reshape(n, gm).astype(jnp.float32)

    # lane-pad only the (tiny) freq array so its DMA is lane-dense instead of
    # a descriptor-granule-bound strided scatter
    fl = _round_up(gm, 128)
    if fl != gm:
        freq2 = jnp.pad(freq2, ((0, 0), (0, fl - gm)))

    budget, vmem_limit = _vmem_budgets()
    padded_row_bytes = 4 * (_round_up(hb, 128) + _round_up(gm * ws, 128)
                            + _round_up(gm * ps, 128) + fl
                            + _round_up(h_out, 128))
    tn = _pick_row_tile(n, padded_row_bytes, budget)
    grid_steps = int(pl.cdiv(n, tn))  # ragged last block handled by Pallas

    kernel = functools.partial(
        _encoder_kernel, group_num=g, max_matched=m,
        word_size=ws, pinyin_size=ps, hidden_bert=hb)

    out = pl.pallas_call(
        kernel,
        out_shape=jax.ShapeDtypeStruct((n, h_out), jnp.float32),
        grid=(grid_steps,),
        in_specs=[
            pl.BlockSpec((tn, hb), lambda i: (i, 0)),
            pl.BlockSpec((tn, gm * ws), lambda i: (i, 0)),
            pl.BlockSpec((tn, gm * ps), lambda i: (i, 0)),
            pl.BlockSpec((tn, fl), lambda i: (i, 0)),
        ],
        out_specs=pl.BlockSpec((tn, h_out), lambda i: (i, 0)),
        compiler_params=pltpu.CompilerParams(
            dimension_semantics=("parallel",),
            vmem_limit_bytes=vmem_limit,
        ),
    )(bert2, lex2, pin2, freq2)

    return out.reshape(b, l, h_out)


def ref_forward(bert_seqs_embed, seqs_lexicon_embed, pinyin_embed,
                lexicons_freq):
    """Pure-JAX reference mirroring the PyTorch forward."""
    b, l, _, _, _ = seqs_lexicon_embed.shape
    lp = jnp.concatenate([seqs_lexicon_embed, pinyin_embed], axis=-1)  # (B,L,G,M,E)
    freq = lexicons_freq.astype(jnp.float32)
    fsum = jnp.sum(freq, axis=(-2, -1), keepdims=True)                 # (B,L,1,1)
    fsum = jnp.where(fsum == 0.0, 1.0, fsum)
    w = jnp.sum(freq[..., None] * lp, axis=-2) / fsum                  # (B,L,G,E)
    w = w.reshape(b, l, -1)
    return jnp.concatenate([bert_seqs_embed, w], axis=-1)


def _make_inputs(seed, B, L, HB, WS, PS, G, M, vocab=100, pinyin_vocab=30):
    key = jax.random.PRNGKey(seed)
    k_tok, k_bert, k_lex, k_pinid, k_pintab, k_freq = jax.random.split(key, 6)

    seqs_token_ids = jax.random.randint(k_tok, (B, L), 0, vocab, dtype=jnp.int32)
    seqs_lexicon_embed = jax.random.normal(k_lex, (B, L, G, M, WS), dtype=jnp.float32)
    seqs_pinyin_ids = jax.random.randint(k_pinid, (B, L, G, M), 0, pinyin_vocab,
                                         dtype=jnp.int32)
    lexicons_freq = jax.random.randint(k_freq, (B, L, G, M), 0, 6, dtype=jnp.int32)
    # exercise the "sum == 0 -> 1" guard at one position
    lexicons_freq = lexicons_freq.at[0, 0].set(0)

    # TODO(synk): the pretrained BERT encoder (and host-side tokenize /
    # lexicon_match) is not replicated; a deterministic token-embedding lookup
    # stands in for bert_seqs_embed (att_token_mask unused).
    bert_table = jax.random.normal(k_bert, (vocab, HB), dtype=jnp.float32) * 0.02
    bert_seqs_embed = bert_table[seqs_token_ids]                       # (B,L,HB)

    # nn.Embedding(len(pinyin2id), pinyin_size, padding_idx=0) equivalent
    pinyin_table = jax.random.normal(k_pintab, (pinyin_vocab, PS), dtype=jnp.float32)
    pinyin_table = pinyin_table.at[0].set(0.0)
    seqs_pinyin_embed = pinyin_table[seqs_pinyin_ids]                  # (B,L,G,M,PS)

    return bert_seqs_embed, seqs_lexicon_embed, seqs_pinyin_embed, lexicons_freq


def _run_case(seed, B, L, HB, WS, PS, G, M):
    bert, lex, pin, freq = _make_inputs(seed, B, L, HB, WS, PS, G, M)
    out = encoder_forward(bert, lex, pin, freq)
    out = jax.block_until_ready(out)
    ref = ref_forward(bert, lex, pin, freq)
    h_out = HB + G * (WS + PS)
    assert out.shape == ref.shape == (B, L, h_out), out.shape
    assert jnp.allclose(out, ref, atol=1e-4, rtol=1e-4), "mismatch vs reference"


if __name__ == "__main__":
    # Small config (scaled-down module defaults: hidden_size 768->32,
    # word_size/pinyin_size 50->16, lexicon_window_size=4 -> M=2, group_num=3).
    # L=7 makes N=14 non-tile-divisible to exercise the ragged edge-block path.
    _run_case(seed=0, B=2, L=7, HB=32, WS=16, PS=16, G=3, M=2)

    # Second config: multi-step grid with a ragged last block and an output
    # width (64 + 3*32 = 160) that is not a multiple of 128 (full-dim block).
    _run_case(seed=1, B=3, L=50, HB=64, WS=16, PS=16, G=3, M=2)

    print("KERNEL_OK")
</pallas_src>

<mosaic_0001>
module attributes {stable_mosaic.version = 11 : i64} {
  func.func @_encoder_kernel(%arg0: i32, %arg1: memref<16x32xf32, #tpu.memory_space<vmem>>, %arg2: memref<16x96xf32, #tpu.memory_space<vmem>>, %arg3: memref<16x96xf32, #tpu.memory_space<vmem>>, %arg4: memref<16x128xf32, #tpu.memory_space<vmem>>, %arg5: memref<16x128xf32, #tpu.memory_space<vmem>>) attributes {dimension_semantics = [#tpu.dimension_semantics<parallel>], iteration_bounds = array<i64: 1>, scalar_prefetch = 0 : i64, scratch_operands = 0 : i64, tpu.core_type = #tpu.core_type<tc>, window_params = [{transform_indices = @transform_0, window_bounds = array<i64: 16, 32>}, {transform_indices = @transform_1, window_bounds = array<i64: 16, 96>}, {transform_indices = @transform_2, window_bounds = array<i64: 16, 96>}, {transform_indices = @transform_3, window_bounds = array<i64: 16, 128>}, {transform_indices = @transform_4, window_bounds = array<i64: 16, 128>}]} {
    %c0 = arith.constant 0 : index
    %c0_0 = arith.constant 0 : index
    %0 = vector.load %arg4[%c0, %c0_0] : memref<16x128xf32, #tpu.memory_space<vmem>>, vector<16x128xf32>
    %cst = arith.constant dense<0.000000e+00> : vector<16xf32>
    %1 = vector.multi_reduction <add>, %0, %cst [1] : vector<16x128xf32> to vector<16xf32>
    %2 = vector.shape_cast %1 : vector<16xf32> to vector<16x1xf32>
    %cst_1 = arith.constant 0.000000e+00 : f32
    %3 = vector.broadcast %cst_1 : f32 to vector<16x1xf32>
    %4 = arith.cmpf oeq, %2, %3 : vector<16x1xf32>
    %cst_2 = arith.constant 1.000000e+00 : f32
    %5 = vector.broadcast %cst_2 : f32 to vector<16x1xf32>
    %6 = arith.select %4, %5, %2 : vector<16x1xi1>, vector<16x1xf32>
    %cst_3 = arith.constant 1.000000e+00 : f32
    %7 = vector.broadcast %cst_3 : f32 to vector<16x1xf32>
    %8 = arith.divf %7, %6 : vector<16x1xf32>
    %c0_4 = arith.constant 0 : index
    %c0_5 = arith.constant 0 : index
    %9 = vector.load %arg1[%c0_4, %c0_5] : memref<16x32xf32, #tpu.memory_space<vmem>>, vector<16x32xf32>
    %c0_6 = arith.constant 0 : index
    %c0_7 = arith.constant 0 : index
    %10 = vector.load %arg5[%c0_6, %c0_7] : memref<16x128xf32, #tpu.memory_space<vmem>>, vector<16x32xf32>
    tpu.vector_store %arg5[%c0_6, %c0_7], %9 {strides = array<i32>} : memref<16x128xf32, #tpu.memory_space<vmem>>, vector<16x32xf32>,
    %cst_8 = arith.constant 0.000000e+00 : f32
    %11 = vector.broadcast %cst_8 : f32 to vector<16x16xf32>
    %cst_9 = arith.constant 0.000000e+00 : f32
    %12 = vector.broadcast %cst_9 : f32 to vector<16x16xf32>
    %13 = vector.extract_strided_slice %0 {offsets = [0, 0], sizes = [16, 1], strides = [1, 1]} : vector<16x128xf32> to vector<16x1xf32>
    %c0_10 = arith.constant 0 : index
    %c0_11 = arith.constant 0 : index
    %14 = vector.load %arg2[%c0_10, %c0_11] : memref<16x96xf32, #tpu.memory_space<vmem>>, vector<16x16xf32>
    %15 = vector.broadcast %13 : vector<16x1xf32> to vector<16x16xf32>
    %16 = arith.mulf %15, %14 : vector<16x16xf32>
    %17 = arith.addf %11, %16 : vector<16x16xf32>
    %c0_12 = arith.constant 0 : index
    %c0_13 = arith.constant 0 : index
    %18 = vector.load %arg3[%c0_12, %c0_13] : memref<16x96xf32, #tpu.memory_space<vmem>>, vector<16x16xf32>
    %19 = vector.broadcast %13 : vector<16x1xf32> to vector<16x16xf32>
    %20 = arith.mulf %19, %18 : vector<16x16xf32>
    %21 = arith.addf %12, %20 : vector<16x16xf32>
    %22 = vector.extract_strided_slice %0 {offsets = [0, 1], sizes = [16, 1], strides = [1, 1]} : vector<16x128xf32> to vector<16x1xf32>
    %c0_14 = arith.constant 0 : index
    %c16 = arith.constant 16 : index
    %23 = vector.load %arg2[%c0_14, %c16] : memref<16x96xf32, #tpu.memory_space<vmem>>, vector<16x16xf32>
    %24 = vector.broadcast %22 : vector<16x1xf32> to vector<16x16xf32>
    %25 = arith.mulf %24, %23 : vector<16x16xf32>
    %26 = arith.addf %17, %25 : vector<16x16xf32>
    %c0_15 = arith.constant 0 : index
    %c16_16 = arith.constant 16 : index
    %27 = vector.load %arg3[%c0_15, %c16_16] : memref<16x96xf32, #tpu.memory_space<vmem>>, vector<16x16xf32>
    %28 = vector.broadcast %22 : vector<16x1xf32> to vector<16x16xf32>
    %29 = arith.mulf %28, %27 : vector<16x16xf32>
    %30 = arith.addf %21, %29 : vector<16x16xf32>
    %31 = vector.broadcast %8 : vector<16x1xf32> to vector<16x16xf32>
    %32 = arith.mulf %26, %31 : vector<16x16xf32>
    %c0_17 = arith.constant 0 : index
    %c32 = arith.constant 32 : index
    %33 = vector.load %arg5[%c0_17, %c32] : memref<16x128xf32, #tpu.memory_space<vmem>>, vector<16x16xf32>
    tpu.vector_store %arg5[%c0_17, %c32], %32 {strides = array<i32>} : memref<16x128xf32, #tpu.memory_space<vmem>>, vector<16x16xf32>,
    %34 = vector.broadcast %8 : vector<16x1xf32> to vector<16x16xf32>
    %35 = arith.mulf %30, %34 : vector<16x16xf32>
    %c0_18 = arith.constant 0 : index
    %c48 = arith.constant 48 : index
    %36 = vector.load %arg5[%c0_18, %c48] : memref<16x128xf32, #tpu.memory_space<vmem>>, vector<16x16xf32>
    tpu.vector_store %arg5[%c0_18, %c48], %35 {strides = array<i32>} : memref<16x128xf32, #tpu.memory_space<vmem>>, vector<16x16xf32>,
    %cst_19 = arith.constant 0.000000e+00 : f32
    %37 = vector.broadcast %cst_19 : f32 to vector<16x16xf32>
    %cst_20 = arith.constant 0.000000e+00 : f32
    %38 = vector.broadcast %cst_20 : f32 to vector<16x16xf32>
    %39 = vector.extract_strided_slice %0 {offsets = [0, 2], sizes = [16, 1], strides = [1, 1]} : vector<16x128xf32> to vector<16x1xf32>
    %c0_21 = arith.constant 0 : index
    %c32_22 = arith.constant 32 : index
    %40 = vector.load %arg2[%c0_21, %c32_22] : memref<16x96xf32, #tpu.memory_space<vmem>>, vector<16x16xf32>
    %41 = vector.broadcast %39 : vector<16x1xf32> to vector<16x16xf32>
    %42 = arith.mulf %41, %40 : vector<16x16xf32>
    %43 = arith.addf %37, %42 : vector<16x16xf32>
    %c0_23 = arith.constant 0 : index
    %c32_24 = arith.constant 32 : index
    %44 = vector.load %arg3[%c0_23, %c32_24] : memref<16x96xf32, #tpu.memory_space<vmem>>, vector<16x16xf32>
    %45 = vector.broadcast %39 : vector<16x1xf32> to vector<16x16xf32>
    %46 = arith.mulf %45, %44 : vector<16x16xf32>
    %47 = arith.addf %38, %46 : vector<16x16xf32>
    %48 = vector.extract_strided_slice %0 {offsets = [0, 3], sizes = [16, 1], strides = [1, 1]} : vector<16x128xf32> to vector<16x1xf32>
    %c0_25 = arith.constant 0 : index
    %c48_26 = arith.constant 48 : index
    %49 = vector.load %arg2[%c0_25, %c48_26] : memref<16x96xf32, #tpu.memory_space<vmem>>, vector<16x16xf32>
    %50 = vector.broadcast %48 : vector<16x1xf32> to vector<16x16xf32>
    %51 = arith.mulf %50, %49 : vector<16x16xf32>
    %52 = arith.addf %43, %51 : vector<16x16xf32>
    %c0_27 = arith.constant 0 : index
    %c48_28 = arith.constant 48 : index
    %53 = vector.load %arg3[%c0_27, %c48_28] : memref<16x96xf32, #tpu.memory_space<vmem>>, vector<16x16xf32>
    %54 = vector.broadcast %48 : vector<16x1xf32> to vector<16x16xf32>
    %55 = arith.mulf %54, %53 : vector<16x16xf32>
    %56 = arith.addf %47, %55 : vector<16x16xf32>
    %57 = vector.broadcast %8 : vector<16x1xf32> to vector<16x16xf32>
    %58 = arith.mulf %52, %57 : vector<16x16xf32>
    %c0_29 = arith.constant 0 : index
    %c64 = arith.constant 64 : index
    %59 = vector.load %arg5[%c0_29, %c64] : memref<16x128xf32, #tpu.memory_space<vmem>>, vector<16x16xf32>
    tpu.vector_store %arg5[%c0_29, %c64], %58 {strides = array<i32>} : memref<16x128xf32, #tpu.memory_space<vmem>>, vector<16x16xf32>,
    %60 = vector.broadcast %8 : vector<16x1xf32> to vector<16x16xf32>
    %61 = arith.mulf %56, %60 : vector<16x16xf32>
    %c0_30 = arith.constant 0 : index
    %c80 = arith.constant 80 : index
    %62 = vector.load %arg5[%c0_30, %c80] : memref<16x128xf32, #tpu.memory_space<vmem>>, vector<16x16xf32>
    tpu.vector_store %arg5[%c0_30, %c80], %61 {strides = array<i32>} : memref<16x128xf32, #tpu.memory_space<vmem>>, vector<16x16xf32>,
    %cst_31 = arith.constant 0.000000e+00 : f32
    %63 = vector.broadcast %cst_31 : f32 to vector<16x16xf32>
    %cst_32 = arith.constant 0.000000e+00 : f32
    %64 = vector.broadcast %cst_32 : f32 to vector<16x16xf32>
    %65 = vector.extract_strided_slice %0 {offsets = [0, 4], sizes = [16, 1], strides = [1, 1]} : vector<16x128xf32> to vector<16x1xf32>
    %c0_33 = arith.constant 0 : index
    %c64_34 = arith.constant 64 : index
    %66 = vector.load %arg2[%c0_33, %c64_34] : memref<16x96xf32, #tpu.memory_space<vmem>>, vector<16x16xf32>
    %67 = vector.broadcast %65 : vector<16x1xf32> to vector<16x16xf32>
    %68 = arith.mulf %67, %66 : vector<16x16xf32>
    %69 = arith.addf %63, %68 : vector<16x16xf32>
    %c0_35 = arith.constant 0 : index
    %c64_36 = arith.constant 64 : index
    %70 = vector.load %arg3[%c0_35, %c64_36] : memref<16x96xf32, #tpu.memory_space<vmem>>, vector<16x16xf32>
    %71 = vector.broadcast %65 : vector<16x1xf32> to vector<16x16xf32>
    %72 = arith.mulf %71, %70 : vector<16x16xf32>
    %73 = arith.addf %64, %72 : vector<16x16xf32>
    %74 = vector.extract_strided_slice %0 {offsets = [0, 5], sizes = [16, 1], strides = [1, 1]} : vector<16x128xf32> to vector<16x1xf32>
    %c0_37 = arith.constant 0 : index
    %c80_38 = arith.constant 80 : index
    %75 = vector.load %arg2[%c0_37, %c80_38] : memref<16x96xf32, #tpu.memory_space<vmem>>, vector<16x16xf32>
    %76 = vector.broadcast %74 : vector<16x1xf32> to vector<16x16xf32>
    %77 = arith.mulf %76, %75 : vector<16x16xf32>
    %78 = arith.addf %69, %77 : vector<16x16xf32>
    %c0_39 = arith.constant 0 : index
    %c80_40 = arith.constant 80 : index
    %79 = vector.load %arg3[%c0_39, %c80_40] : memref<16x96xf32, #tpu.memory_space<vmem>>, vector<16x16xf32>
    %80 = vector.broadcast %74 : vector<16x1xf32> to vector<16x16xf32>
    %81 = arith.mulf %80, %79 : vector<16x16xf32>
    %82 = arith.addf %73, %81 : vector<16x16xf32>
    %83 = vector.broadcast %8 : vector<16x1xf32> to vector<16x16xf32>
    %84 = arith.mulf %78, %83 : vector<16x16xf32>
    %c0_41 = arith.constant 0 : index
    %c96 = arith.constant 96 : index
    %85 = vector.load %arg5[%c0_41, %c96] : memref<16x128xf32, #tpu.memory_space<vmem>>, vector<16x16xf32>
    tpu.vector_store %arg5[%c0_41, %c96], %84 {strides = array<i32>} : memref<16x128xf32, #tpu.memory_space<vmem>>, vector<16x16xf32>,
    %86 = vector.broadcast %8 : vector<16x1xf32> to vector<16x16xf32>
    %87 = arith.mulf %82, %86 : vector<16x16xf32>
    %c0_42 = arith.constant 0 : index
    %c112 = arith.constant 112 : index
    %88 = vector.load %arg5[%c0_42, %c112] : memref<16x128xf32, #tpu.memory_space<vmem>>, vector<16x16xf32>
    tpu.vector_store %arg5[%c0_42, %c112], %87 {strides = array<i32>} : memref<16x128xf32, #tpu.memory_space<vmem>>, vector<16x16xf32>,
    return
  }
  func.func @transform_0(%arg0: i32) -> (i32, i32) {
    %c0_i32 = arith.constant 0 : i32
    %c0_i32_0 = arith.constant 0 : i32
    return %arg0, %c0_i32 : i32, i32
  }
  func.func @transform_1(%arg0: i32) -> (i32, i32) {
    %c0_i32 = arith.constant 0 : i32
    %c0_i32_0 = arith.constant 0 : i32
    return %arg0, %c0_i32 : i32, i32
  }
  func.func @transform_2(%arg0: i32) -> (i32, i32) {
    %c0_i32 = arith.constant 0 : i32
    %c0_i32_0 = arith.constant 0 : i32
    return %arg0, %c0_i32 : i32, i32
  }
  func.func @transform_3(%arg0: i32) -> (i32, i32) {
    %c0_i32 = arith.constant 0 : i32
    %c0_i32_0 = arith.constant 0 : i32
    return %arg0, %c0_i32 : i32, i32
  }
  func.func @transform_4(%arg0: i32) -> (i32, i32) {
    %c0_i32 = arith.constant 0 : i32
    %c0_i32_0 = arith.constant 0 : i32
    return %arg0, %c0_i32 : i32, i32
  }
}

</mosaic_0001>

<bundles_post_ra>
// kernel: tpu_custom_call.1
= control target key start
LH: loop header
LB: loop body
LE: loop exit
PB: predicated region body
PF: predicated region fallthrough
CT: control target
= control target key end

     0   :  { %9 = vsyncpa [#allocation3], 0  ;;  %s681_s0 = inlined_call_operand.hbm [shape: f32[14,32], index: 0, kind: input, shape index: {}]   ;;  %s682_s1 = inlined_call_operand.hbm [shape: f32[14,96], index: 1, kind: input, shape index: {}]   ;;  %s683_s2 = inlined_call_operand.hbm [shape: f32[14,96], index: 2, kind: input, shape index: {}]   ;;  %s684_s3 = inlined_call_operand.hbm [shape: f32[14,128], index: 3, kind: input, shape index: {}]   ;;  %s685_s4 = inlined_call_operand.hbm [shape: f32[14,128], index: 4, kind: output, shape index: {}]  }
   0x1   :  { %10 = vsyncpa [#allocation6], 0 }
   0x2   :  { %11 = vsyncpa [#allocation9], 0 }
   0x3   :  { %12 = vsyncpa [#allocation4], 0  ;;  %s30_s17 = sshll.u32 %s682_s1, 4  ;;  %s542_s18 = smov [#allocation5]   ;;  %s31_s17 = int_to_ptr.hbm [resolvable:$true] %s30_s17 }
   0x4   :  { %s32_s19 = sshll.u32 %s542_s18, 4  ;;  %s17_s22 = sshll.u32 %s681_s0, 4  ;;  %s33_s19 = int_to_ptr.vmem [resolvable:$true] %s32_s19  ;;  %s18_s22 = int_to_ptr.hbm [resolvable:$true] %s17_s22 }
   0x5   :  { %s543_s23 = smov 128   ;;  %s544_s24 = smov 8  }
   0x6   :  { %38 = dma.hbm_to_vmem [thread:$0]  %s31_s17, 256, %s33_s19, [#allocation6], %s543_s23, %s543_s23, %s544_s24  }
   0x7   :  { %s545_s25 = smov [#allocation2]   ;;  %s43_s1 = sshll.u32 %s683_s2, 4  ;;  %s44_s1 = int_to_ptr.hbm [resolvable:$true] %s43_s1 }
   0x8   :  { %s19_s26 = sshll.u32 %s545_s25, 4  ;;  %s56_s30 = sshll.u32 %s684_s3, 4  ;;  %s20_s26 = int_to_ptr.vmem [resolvable:$true] %s19_s26  ;;  %s57_s30 = int_to_ptr.hbm [resolvable:$true] %s56_s30 }
   0x9   :  { %25 = dma.hbm_to_vmem [thread:$0]  %s18_s22, 256, %s20_s26, [#allocation3], %s543_s23, %s543_s23, %s544_s24  }
   0xa   :  { %s546_s5 = smov [#allocation7]   ;;  %s547_s7 = smov [#allocation8]  }
   0xb   :  { %s45_s6 = sshll.u32 %s546_s5, 4  ;;  %s58_s2 = sshll.u32 %s547_s7, 4  ;;  %s46_s6 = int_to_ptr.vmem [resolvable:$true] %s45_s6  ;;  %s59_s2 = int_to_ptr.vmem [resolvable:$true] %s58_s2 }
   0xc   :  { %51 = dma.hbm_to_vmem [thread:$0]  %s44_s1, 256, %s46_s6, [#allocation6], %s543_s23, %s543_s23, %s544_s24  }
   0xd   :  { %64 = dma.hbm_to_vmem [thread:$0]  %s57_s30, 256, %s59_s2, [#allocation9], %s543_s23, %s543_s23, %s544_s24  }
   0xe   :  { %534 = dma.done.wait [#allocation3], 256  }
   0xf   :  { %535 = vsyncadd [#allocation3], 4294967040 }
  0x10   :  { %536 = dma.done.wait [#allocation6], 512  }
  0x11   :  { %537 = vsyncadd [#allocation6], 4294966784 }
  0x12   :  { %538 = dma.done.wait [#allocation9], 256  }
  0x13   :  { %539 = vsyncadd [#allocation9], 4294967040  ;;  %v548_v0 = vmov 1   ;;  %v549_v1 = vmov 0   ;;  %v550_v2 = vmov 3   ;;  %v81_v3 = vld [vmem:[#allocation8] sm:$0xff] }
  0x14   :  { %400 = vset.pattern.permute.xlu2 %v548_v0  ;;  %399 = vset.pattern.permute.xlu1 %v549_v1  ;;  %v82_v4 = vld [vmem:[#allocation8 + $0x8] sm:$0xff]  ;;  %v551_v5 = vmov 5   ;;  %v552_v6 = vmov 2   ;;  %v553_v7 = vmov 4   ;;  %v607_v8 = vld [vmem:[#allocation5] sm:$0xff]  ;;  %s554_s3 = smov 112  }
  0x15   :  { %401 = vset.pattern.permute.xlu0 %v550_v2  ;;  %149 = vperm.xlu2 %400, %v81_v3   ;;  %v611_v11 = vld [vmem:[#allocation7] sm:$0xff]  ;;  %v127_v12 = vld [vmem:[#allocation5 + $0x8] sm:$0xff]  ;;  %v143_v16 = vld [vmem:[#allocation7 + $0x8] sm:$0xff]  ;;  %s555_s8 = smov 32   ;;  %s556_s9 = smov 48   ;;  %vm123_vm10 = vcmask 261120  }
  0x16   :  { %130 = vperm.xlu1 %399, %v81_v3   ;;  %83 = vadd.xlane.f32.xlu0 %v81_v3  ;;  %vm190_vm11 = vcmask 392448   ;;  %vm203_vm12 = vcmask 523648   ;;  %vm268_vm13 = vcmask 654848   ;;  %vm281_vm14 = vcmask 786048   ;;  %s557_s10 = smov [#allocation10]   ;;  %s368_s14 = sshll.u32 %s685_s4, 4  ;;  %s369_s14 = int_to_ptr.hbm [resolvable:$true] %s368_s14 }
  0x17   :  { %vm346_vm15 = vcmask 917248   ;;  %s366_s11 = sshll.u32 %s557_s10, 4  ;;  %s367_s11 = int_to_ptr.vmem [resolvable:$true] %s366_s11 }
  0x1d   :  { %153 = vperm.xlu2 %400, %v82_v4  }
  0x1e   :  { %135 = vperm.xlu1 %399, %v82_v4   ;;  %85 = vadd.xlane.f32.xlu0 %v82_v4 }
  0x25   :  { %403 = vset.pattern.permute.xlu2 %v551_v5 }
  0x26   :  { %402 = vset.pattern.permute.xlu1 %v550_v2  ;;  %305 = vperm.xlu2 %403, %v81_v3  }
  0x27   :  { %231 = vperm.xlu1 %402, %v82_v4  }
  0x2e   :  { %406 = vset.pattern.permute.xlu2 %v552_v6 }
  0x2f   :  { %404 = vset.pattern.permute.xlu1 %v551_v5  ;;  %213 = vperm.xlu2 %406, %v82_v4  }
  0x30   :  { %309 = vperm.xlu1 %404, %v82_v4  }
  0x32   :  { %227 = vperm.xlu0 %401, %v81_v3  }
  0x37   :  { %408 = vset.pattern.permute.xlu2 %v553_v7 }
  0x38   :  { %405 = vset.pattern.permute.xlu1 %v552_v6  ;;  %291 = vperm.xlu2 %408, %v82_v4  }
  0x39   :  { %209 = vperm.xlu1 %405, %v81_v3  }
  0x3a   :  { %409 = vset.pattern.permute.xlu0 %v551_v5 }
  0x41   :  { %407 = vset.pattern.permute.xlu1 %v553_v7 }
  0x42   :  { %287 = vperm.xlu1 %407, %v81_v3  }
  0x6f   :  { %v150_v9 = vpop.permute.xlu2 %149 }
  0x70   :  { %v156_v10 = vmul.f32 %v150_v9, %v607_v8  ;;  %v168_v13 = vmul.f32 %v150_v9, %v611_v11 }
  0x72   :  { %160 = vrot.lane.b32.xlu2 %v156_v10, %s554_s3 }
  0x77   :  { %v154_v14 = vpop.permute.xlu2 %153 }
  0x78   :  { %v157_v15 = vmul.f32 %v154_v14, %v127_v12  ;;  %v169_v17 = vmul.f32 %v154_v14, %v143_v16 }
  0x7a   :  { %172 = vrot.lane.b32.xlu2 %v168_v13, %s554_s3  ;;  %162 = vrot.lane.b32.xlu1 %v157_v15, %s554_s3 }
  0x80   :  { %v306_v20 = vpop.permute.xlu2 %305 }
  0x81   :  { %v324_v31 = vmul.f32 %v306_v20, %v611_v11  ;;  %v312_v39 = vmul.f32 %v306_v20, %v607_v8 }
  0x82   :  { %174 = vrot.lane.b32.xlu1 %v169_v17, %s554_s3 }
  0x88   :  { %v131_v18 = vpop.permute.xlu1 %130 }
  0x89   :  { %v84_v23 = vpop.xlane.xlu0 %83  ;;  %v214_v24 = vpop.permute.xlu2 %213  ;;  %v138_v50 = vmul.f32 %v131_v18, %v607_v8  ;;  %v144_v58 = vmul.f32 %v611_v11, %v131_v18 }
  0x8a   :  { %v621_v26 = vmul.f32 %v214_v24, %v127_v12  ;;  %v623_v27 = vmul.f32 %v214_v24, %v143_v16  ;;  %vm87_vm0 = vcmp.eq.f32.partialorder %v84_v23, 0.0 }
  0x8b   :  { %v89_v41 = vsel %vm87_vm0, 1.0, %v84_v23  ;;  %vm359_vm0 = vcmask 1048448  }
  0x8c   :  { %410 = vrcp.f32 %v89_v41  ;;  %v102_v48 = vand.u32 2147483648, %v89_v41  ;;  %vm96_vm2 = vweird.f32 %v89_v41  ;;  %v100_v49 = vand.u32 2147483647, %v89_v41 }
  0x8e   :  { %v103_v52 = vor.u32 1.1754944e-38, %v102_v48  ;;  %vm101_vm5 = vcmp.eq.f32.partialorder %v100_v49, 8.507059e+37 }
  0x90   :  { %v136_v19 = vpop.permute.xlu1 %135 }
  0x91   :  { %v617_v21 = vmul.f32 %v136_v19, %v127_v12  ;;  %v619_v22 = vmul.f32 %v143_v16, %v136_v19  ;;  %v86_v30 = vpop.xlane.xlu0 %85 }
  0x92   :  { %v292_v32 = vpop.permute.xlu2 %291  ;;  %v411_v43 = vpop.eup %410  ;;  %vm88_vm4 = vcmp.eq.f32.partialorder %v86_v30, 0.0 }
  0x93   :  { %v628_v33 = vmul.f32 %v292_v32, %v127_v12  ;;  %v630_v34 = vmul.f32 %v292_v32, %v143_v16  ;;  %v92_v44 = vmul.f32 %v411_v43, %v89_v41  ;;  %vm97_vm1 = vweird.f32 %v411_v43 }
  0x94   :  { %vm98_vm3 = vmor %vm96_vm2, %vm97_vm1  ;;  %v90_v56 = vsel %vm88_vm4, 1.0, %v86_v30 }
  0x95   :  { %v93_v45 = vsub.f32 1.0, %v92_v44  ;;  %412 = vrcp.f32 %v90_v56  ;;  %v117_v5 = vand.u32 2147483648, %v90_v56  ;;  %vm111_vm7 = vweird.f32 %v90_v56 }
  0x96   :  { %v115_v6 = vand.u32 2147483647, %v90_v56 }
  0x97   :  { %v94_v46 = vmul.f32 %v411_v43, %v93_v45  ;;  %v118_v9 = vor.u32 1.1754944e-38, %v117_v5 }
  0x98   :  { %vm116_vm9 = vcmp.eq.f32.partialorder %v115_v6, 8.507059e+37 }
  0x99   :  { %v232_v25 = vpop.permute.xlu1 %231  ;;  %v95_v47 = vadd.f32 %v411_v43, %v94_v46  ;;  %v122_v46 = vld [vmem:[#allocation2 + $0x8] sm:$0xff] }
  0x9a   :  { %v235_v28 = vmul.f32 %v232_v25, %v127_v12  ;;  %v247_v29 = vmul.f32 %v232_v25, %v143_v16  ;;  %125 = vst.msk [vmem:[#allocation10 + $0x8] sm:$0xff] %vm123_vm10, %v122_v46 }
  0x9b   :  { %v99_v51 = vsel %vm98_vm3, %v411_v43, %v95_v47  ;;  %v413_v62 = vpop.eup %412 }
  0x9c   :  { %252 = vrot.lane.b32.xlu1 %v247_v29, %s554_s3  ;;  %240 = vrot.lane.b32.xlu0 %v235_v28, %s554_s3  ;;  %v642_v55 = vsel %vm101_vm5, %v103_v52, %v99_v51  ;;  %v107_v0 = vmul.f32 %v413_v62, %v90_v56  ;;  %vm112_vm6 = vweird.f32 %v413_v62 }
  0x9d   :  { %vm113_vm8 = vmor %vm111_vm7, %vm112_vm6 }
  0x9e   :  { %v108_v1 = vsub.f32 1.0, %v107_v0 }
  0xa0   :  { %v109_v3 = vmul.f32 %v413_v62, %v108_v1 }
  0xa2   :  { %v310_v38 = vpop.permute.xlu1 %309  ;;  %v110_v4 = vadd.f32 %v413_v62, %v109_v3 }
  0xa3   :  { %v313_v40 = vmul.f32 %v310_v38, %v127_v12  ;;  %v325_v42 = vmul.f32 %v310_v38, %v143_v16 }
  0xa4   :  { %328 = vrot.lane.b32.xlu1 %v324_v31, %s554_s3  ;;  %v228_v35 = vpop.permute.xlu0 %227  ;;  %v114_v7 = vsel %vm113_vm8, %v413_v62, %v110_v4 }
  0xa5   :  { %v234_v36 = vmul.f32 %v228_v35, %v607_v8  ;;  %v246_v37 = vmul.f32 %v228_v35, %v611_v11  ;;  %v119_v13 = vsel %vm116_vm9, %v118_v9, %v114_v7 }
  0xa7   :  { %250 = vrot.lane.b32.xlu0 %v246_v37, %s554_s3  ;;  %238 = vrot.lane.b32.xlu2 %v234_v36, %s554_s3  ;;  %v121_v36 = vld [vmem:[#allocation2] sm:$0xff] }
  0xa8   :  { %124 = vst.msk [vmem:[#allocation10] sm:$0xff] %vm123_vm10, %v121_v36 }
  0xab   :  { %v210_v63 = vpop.permute.xlu1 %209 }
  0xac   :  { %v216_v18 = vmul.f32 %v210_v63, %v607_v8 }
  0xaf   :  { %318 = vrot.lane.b32.xlu0 %v313_v40, %s554_s3  ;;  %316 = vrot.lane.b32.xlu2 %v312_v39, %s554_s3  ;;  %v222_v40 = vmul.f32 %v210_v63, %v611_v11 }
  0xb4   :  { %v288_v2 = vpop.permute.xlu1 %287 }
  0xb5   :  { %v294_v32 = vmul.f32 %v288_v2, %v607_v8  ;;  %v300_v37 = vmul.f32 %v288_v2, %v611_v11 }
  0xb7   :  { %330 = vrot.lane.b32.xlu2 %v325_v42, %s554_s3 }
  0xcc   :  { %v161_v53 = vpop.permute.xlu2 %160 }
  0xcd   :  { %v166_v54 = vadd.f32 %v161_v53, %v138_v50 }
  0xcf   :  { %v180_v57 = vmul.f32 %v166_v54, %v642_v55 }
  0xd1   :  { %184 = vrot.lane.b32.xlu0 %v180_v57, %s555_s8 }
  0xd4   :  { %v173_v59 = vpop.permute.xlu2 %172 }
  0xd5   :  { %v178_v60 = vadd.f32 %v173_v59, %v144_v58 }
  0xd7   :  { %v193_v61 = vmul.f32 %v178_v60, %v642_v55 }
  0xd9   :  { %197 = vrot.lane.b32.xlu2 %v193_v61, %s556_s9 }
  0xec   :  { %v163_v10 = vpop.permute.xlu1 %162 }
  0xed   :  { %v167_v12 = vadd.f32 %v163_v10, %v617_v21 }
  0xef   :  { %v181_v14 = vmul.f32 %v167_v12, %v119_v13 }
  0xf1   :  { %186 = vrot.lane.b32.xlu1 %v181_v14, %s555_s8 }
  0xf4   :  { %v175_v15 = vpop.permute.xlu1 %174 }
  0xf5   :  { %v179_v16 = vadd.f32 %v175_v15, %v619_v22 }
  0xf7   :  { %v194_v17 = vmul.f32 %v179_v16, %v119_v13 }
  0xf9   :  { %199 = vrot.lane.b32.xlu0 %v194_v17, %s556_s9 }
 0x101   :  { %v239_v19 = vpop.permute.xlu2 %238 }
 0x102   :  { %v244_v20 = vadd.f32 %v239_v19, %v216_v18 }
 0x104   :  { %v258_v23 = vmul.f32 %v244_v20, %v642_v55 }
 0x106   :  { %262 = vrot.lane.b32.xlu1 %v258_v23, %s555_s8 }
 0x109   :  { %v317_v24 = vpop.permute.xlu2 %316 }
 0x10a   :  { %v322_v38 = vadd.f32 %v317_v24, %v294_v32 }
 0x10c   :  { %v336_v8 = vmul.f32 %v322_v38, %v642_v55 }
 0x10e   :  { %v253_v21 = vpop.permute.xlu1 %252  ;;  %v241_v25 = vpop.permute.xlu0 %240 }
 0x10f   :  { %v257_v28 = vadd.f32 %v253_v21, %v623_v27  ;;  %v245_v29 = vadd.f32 %v241_v25, %v621_v26 }
 0x111   :  { %v272_v30 = vmul.f32 %v257_v28, %v119_v13  ;;  %v259_v22 = vmul.f32 %v245_v29, %v119_v13  ;;  %v331_v31 = vpop.permute.xlu2 %330 }
 0x112   :  { %v335_v35 = vadd.f32 %v331_v31, %v630_v34 }
 0x113   :  { %277 = vrot.lane.b32.xlu1 %v272_v30, %s556_s9  ;;  %264 = vrot.lane.b32.xlu2 %v259_v22, %s555_s8 }
 0x114   :  { %v350_v39 = vmul.f32 %v335_v35, %v119_v13 }
 0x116   :  { %v329_v26 = vpop.permute.xlu1 %328 }
 0x117   :  { %v334_v27 = vadd.f32 %v329_v26, %v300_v37 }
 0x119   :  { %v349_v34 = vmul.f32 %v334_v27, %v642_v55  ;;  %v251_v41 = vpop.permute.xlu0 %250 }
 0x11a   :  { %v256_v42 = vadd.f32 %v251_v41, %v222_v40 }
 0x11b   :  { %353 = vrot.lane.b32.xlu1 %v349_v34, %s556_s9  ;;  %340 = vrot.lane.b32.xlu2 %v336_v8, %s555_s8 }
 0x11c   :  { %v271_v43 = vmul.f32 %v256_v42, %v642_v55 }
 0x11e   :  { %275 = vrot.lane.b32.xlu0 %v271_v43, %s556_s9 }
 0x121   :  { %v319_v44 = vpop.permute.xlu0 %318 }
 0x122   :  { %v323_v45 = vadd.f32 %v319_v44, %v628_v33 }
 0x123   :  { %355 = vrot.lane.b32.xlu2 %v350_v39, %s556_s9 }
 0x124   :  { %v337_v11 = vmul.f32 %v323_v45, %v119_v13 }
 0x126   :  { %342 = vrot.lane.b32.xlu0 %v337_v11, %s555_s8 }
 0x133   :  { %v198_v48 = vpop.permute.xlu2 %197 }
 0x143   :  { %v185_v47 = vpop.permute.xlu0 %184 }
 0x144   :  { %191 = vst.msk [vmem:[#allocation10] sm:$0xff] %vm190_vm11, %v185_v47 }
 0x145   :  { %204 = vst.msk [vmem:[#allocation10] sm:$0xff] %vm203_vm12, %v198_v48 }
 0x163   :  { %v187_v49 = vpop.permute.xlu1 %186 }
 0x164   :  { %192 = vst.msk [vmem:[#allocation10 + $0x8] sm:$0xff] %vm190_vm11, %v187_v49 }
 0x16b   :  { %v200_v50 = vpop.permute.xlu0 %199 }
 0x16c   :  { %205 = vst.msk [vmem:[#allocation10 + $0x8] sm:$0xff] %vm203_vm12, %v200_v50 }
 0x16d   :  { %v265_v33 = vpop.permute.xlu2 %264 }
 0x16e   :  { %270 = vst.msk [vmem:[#allocation10 + $0x8] sm:$0xff] %vm268_vm13, %v265_v33 }
 0x175   :  { %v341_v53 = vpop.permute.xlu2 %340 }
 0x178   :  { %v263_v51 = vpop.permute.xlu1 %262 }
 0x179   :  { %269 = vst.msk [vmem:[#allocation10] sm:$0xff] %vm268_vm13, %v263_v51 }
 0x17d   :  { %v356_v57 = vpop.permute.xlu2 %355 }
 0x185   :  { %v278_v52 = vpop.permute.xlu1 %277 }
 0x186   :  { %283 = vst.msk [vmem:[#allocation10 + $0x8] sm:$0xff] %vm281_vm14, %v278_v52 }
 0x18d   :  { %v354_v55 = vpop.permute.xlu1 %353 }
 0x190   :  { %v276_v54 = vpop.permute.xlu0 %275 }
 0x191   :  { %282 = vst.msk [vmem:[#allocation10] sm:$0xff] %vm281_vm14, %v276_v54 }
 0x192   :  { %347 = vst.msk [vmem:[#allocation10] sm:$0xff] %vm346_vm15, %v341_v53 }
 0x193   :  { %360 = vst.msk [vmem:[#allocation10] sm:$0xff] %vm359_vm0, %v354_v55 }
 0x198   :  { %v343_v56 = vpop.permute.xlu0 %342 }
 0x199   :  { %348 = vst.msk [vmem:[#allocation10 + $0x8] sm:$0xff] %vm346_vm15, %v343_v56 }
 0x19a   :  { %361 = vst.msk [vmem:[#allocation10 + $0x8] sm:$0xff] %vm359_vm0, %v356_v57 }
 0x19b   :  { %374 = dma.vmem_to_hbm [thread:$0]  %s367_s11, 256, %s369_s14, [#allocation4], %s543_s23, %s543_s23, %s544_s24  }
 0x19c   :  { %540 = dma.done.wait [#allocation4], 256  }
 0x19d   :  { %541 = vsyncadd [#allocation4], 4294967040 }
 0x19e   :  { %379 = vsyncpa [#allocation3], 1 }
 0x19f   :  { %380 = vsyncpa [#allocation6], 1 }
 0x1a0   :  { %381 = vsyncpa [#allocation9], 1 }
 0x1a1   :  { %382 = vsyncpa [#allocation4], 1 }

</bundles_post_ra>
